<compile_context>
chip_gen: v6e
topology: v6e:2x2x1
jax: 0.10.0
libtpu: 0.0.40
codegen_flags: <defaults>
</compile_context>

<pallas_src>
import functools

import jax
import jax.numpy as jnp
from jax import lax
from jax.experimental import pallas as pl
from jax.experimental.pallas import tpu as pltpu

_LANES = 128
_CHUNK_ROWS = 512            # rows per in-kernel accumulation chunk
_SINGLE_BLOCK_MAX_ROWS = 1024  # below this: one block + in-kernel scalar finalize


def _loss_kernel(o_ref, l_ref, out_ref, *, logistic: bool, total_n: int,
                 block_rows: int, chunk_rows: int, needs_mask: bool,
                 scalar_out: bool):
    base = pl.program_id(0) * (block_rows * _LANES)

    def tile_loss(row_off, nrows):
        o = o_ref[pl.ds(row_off, nrows), :].astype(jnp.float32)
        y = l_ref[pl.ds(row_off, nrows), :].astype(jnp.float32)
        if logistic:
            # torch.nn.BCELoss: -(y*log(p) + (1-y)*log(1-p)), logs clamped at
            # -100 BEFORE the multiply.
            log_p = jnp.maximum(jnp.log(o), -100.0)
            log_1mp = jnp.maximum(jnp.log1p(-o), -100.0)
            val = -(y * log_p + (1.0 - y) * log_1mp)
        else:
            d = o - y
            val = 0.5 * d * d
        if needs_mask:
            # Validity mask over global flat element index; zeroes both the
            # <1024-element wrapper pad and Pallas' block-boundary padding.
            ridx = lax.broadcasted_iota(jnp.int32, (nrows, _LANES), 0)
            cidx = lax.broadcasted_iota(jnp.int32, (nrows, _LANES), 1)
            gidx = base + (row_off + ridx) * _LANES + cidx
            val = jnp.where(gidx < total_n, val, 0.0)
        # VPU-only partial reduction: fold groups of 8 rows into one (8,128) vreg.
        return jnp.sum(val.reshape(nrows // 8, 8, _LANES), axis=0)

    if block_rows > chunk_rows and block_rows % chunk_rows == 0:
        # Chunked accumulation: avoids full-block (MiB-scale) elementwise temps.
        n_chunks = block_rows // chunk_rows

        def body(g, acc):
            off = pl.multiple_of(g * chunk_rows, chunk_rows)
            return acc + tile_loss(off, chunk_rows)

        partial = lax.fori_loop(0, n_chunks, body,
                                jnp.zeros((8, _LANES), jnp.float32),
                                unroll=n_chunks <= 16)
    else:
        partial = tile_loss(0, block_rows)

    if scalar_out:
        # Single-block (small) case: finish reduction in-kernel (XLU slot) and
        # write the mean directly; no trailing XLA reduce op needed.
        out_ref[0, 0] = jnp.sum(partial) / jnp.float32(total_n)
    else:
        out_ref[0, :, :] = partial


def loss_function(output, label, model_type: str, max_block_rows: int = 8192):
    """Pallas implementation of LossFunction.forward. Returns a scalar f32."""
    assert output.shape == label.shape
    total_n = int(output.size)
    logistic = model_type == "logistic"

    flat_o = output.reshape(-1)
    flat_l = label.reshape(-1)

    # Lane-dense (rows, 128) slab; rows must be a multiple of 8 (sublane tile).
    rows = pl.cdiv(total_n, _LANES)
    rows = ((rows + 7) // 8) * 8
    padded_n = rows * _LANES
    if padded_n != total_n:
        # Minimal pad (< 8*128 elements) only so the flat array reshapes to
        # (rows, 128).  The in-kernel mask (not the pad value) decides which
        # elements contribute.
        # TODO(synk): a 1-D BlockSpec could avoid even this copy for unaligned inputs.
        flat_o = jnp.pad(flat_o, (0, padded_n - total_n))
        flat_l = jnp.pad(flat_l, (0, padded_n - total_n))

    o2 = flat_o.reshape(rows, _LANES)
    l2 = flat_l.reshape(rows, _LANES)

    max_block_rows = max(8, (int(max_block_rows) // 8) * 8)
    if rows <= _SINGLE_BLOCK_MAX_ROWS:
        block_rows = rows
    else:
        # >= 2 blocks so the "parallel" grid axis shards across both v7x TCs
        # (no effect on single-TC v5e/v6e); each block capped at max_block_rows.
        target_blocks = max(2, pl.cdiv(rows, max_block_rows))
        block_rows = pl.cdiv(rows, target_blocks)
        block_rows = ((block_rows + _CHUNK_ROWS - 1) // _CHUNK_ROWS) * _CHUNK_ROWS
        block_rows = min(block_rows, max_block_rows)
    num_blocks = pl.cdiv(rows, block_rows)
    scalar_out = num_blocks == 1
    needs_mask = (padded_n != total_n) or (rows % block_rows != 0)

    kernel = functools.partial(
        _loss_kernel, logistic=logistic, total_n=total_n,
        block_rows=block_rows, chunk_rows=_CHUNK_ROWS,
        needs_mask=needs_mask, scalar_out=scalar_out)

    if scalar_out:
        out_shape = jax.ShapeDtypeStruct((1, 1), jnp.float32)
        out_specs = pl.BlockSpec(memory_space=pltpu.MemorySpace.SMEM)
    else:
        out_shape = jax.ShapeDtypeStruct((num_blocks, 8, _LANES), jnp.float32)
        out_specs = pl.BlockSpec((1, 8, _LANES), lambda i: (i, 0, 0))

    result = pl.pallas_call(
        kernel,
        out_shape=out_shape,
        grid_spec=pltpu.PrefetchScalarGridSpec(
            num_scalar_prefetch=0,
            grid=(num_blocks,),
            in_specs=[
                pl.BlockSpec((block_rows, _LANES), lambda i: (i, 0)),
                pl.BlockSpec((block_rows, _LANES), lambda i: (i, 0)),
            ],
            out_specs=out_specs,
        ),
        compiler_params=pltpu.CompilerParams(
            dimension_semantics=("parallel",),
            vmem_limit_bytes=32 * 1024 * 1024,
        ),
    )(o2, l2)

    if scalar_out:
        return result[0, 0]
    # Tiny final cross-block reduction + mean done in XLA (multi-block case).
    return jnp.sum(result) / jnp.float32(total_n)


if __name__ == "__main__":
    key = jax.random.PRNGKey(0)
    k1, k2 = jax.random.split(key)

    # Logical NCHW shape (2, 4, 16, 16) -> 2048 elements -> (16, 128), grid=(1,)
    shape = (2, 4, 16, 16)
    logits = jax.random.normal(k1, shape, jnp.float32)
    probs = jax.nn.sigmoid(logits)                       # in (0, 1) for BCE
    labels = (jax.random.uniform(k2, shape) > 0.5).astype(jnp.float32)

    # --- logistic branch (BCELoss, mean reduction) ---
    bce = jax.block_until_ready(loss_function(probs, labels, "logistic"))
    bce_ref = jnp.mean(
        -(labels * jnp.maximum(jnp.log(probs), -100.0)
          + (1.0 - labels) * jnp.maximum(jnp.log1p(-probs), -100.0)))
    assert jnp.allclose(bce, bce_ref, atol=1e-5, rtol=1e-5), (bce, bce_ref)

    # --- default branch (0.5 * MSE) ---
    preds = jax.random.normal(k1, shape, jnp.float32)
    targets = jax.random.normal(k2, shape, jnp.float32)
    mse = jax.block_until_ready(loss_function(preds, targets, "regression"))
    mse_ref = 0.5 * jnp.mean((preds - targets) ** 2)
    assert jnp.allclose(mse, mse_ref, atol=1e-5, rtol=1e-5), (mse, mse_ref)

    # --- secondary check: unaligned size, multi-block path (mask + chunking) ---
    big_shape = (2, 4, 200, 200)  # 320000 elems -> rows=2504, 2 parallel blocks
    p2 = jax.nn.sigmoid(jax.random.normal(k1, big_shape, jnp.float32))
    y2 = (jax.random.uniform(k2, big_shape) > 0.5).astype(jnp.float32)
    bce2 = jax.block_until_ready(loss_function(p2, y2, "logistic"))
    bce2_ref = jnp.mean(
        -(y2 * jnp.maximum(jnp.log(p2), -100.0)
          + (1.0 - y2) * jnp.maximum(jnp.log1p(-p2), -100.0)))
    assert jnp.allclose(bce2, bce2_ref, atol=1e-5, rtol=2e-4), (bce2, bce2_ref)

    mse2 = jax.block_until_ready(loss_function(p2, y2, "regression"))
    mse2_ref = 0.5 * jnp.mean((p2 - y2) ** 2)
    assert jnp.allclose(mse2, mse2_ref, atol=1e-5, rtol=2e-4), (mse2, mse2_ref)

    print("KERNEL_OK")
</pallas_src>

<mosaic_0001>
module attributes {stable_mosaic.version = 11 : i64} {
  func.func @_loss_kernel(%arg0: i32, %arg1: memref<16x128xf32, #tpu.memory_space<vmem>>, %arg2: memref<16x128xf32, #tpu.memory_space<vmem>>, %arg3: memref<1x1xf32, #tpu.memory_space<smem>>) attributes {dimension_semantics = [#tpu.dimension_semantics<parallel>], iteration_bounds = array<i64: 1>, scalar_prefetch = 0 : i64, scratch_operands = 0 : i64, tpu.core_type = #tpu.core_type<tc>, window_params = [{transform_indices = @transform_0, window_bounds = array<i64: 16, 128>}, {transform_indices = @transform_1, window_bounds = array<i64: 16, 128>}, {transform_indices = @transform_2, window_bounds = array<i64: 1, 1>}]} {
    %c0 = arith.constant 0 : index
    %c0_0 = arith.constant 0 : index
    %0 = vector.load %arg1[%c0, %c0_0] : memref<16x128xf32, #tpu.memory_space<vmem>>, vector<16x128xf32>
    %c0_1 = arith.constant 0 : index
    %c0_2 = arith.constant 0 : index
    %1 = vector.load %arg2[%c0_1, %c0_2] : memref<16x128xf32, #tpu.memory_space<vmem>>, vector<16x128xf32>
    %2 = math.log %0 : vector<16x128xf32>
    %cst = arith.constant -1.000000e+02 : f32
    %3 = vector.broadcast %cst : f32 to vector<16x128xf32>
    %4 = arith.maximumf %2, %3 : vector<16x128xf32>
    %cst_3 = arith.constant 0.000000e+00 : f32
    %5 = vector.broadcast %cst_3 : f32 to vector<16x128xf32>
    %6 = arith.subf %5, %0 : vector<16x128xf32>
    %7 = math.log1p %6 : vector<16x128xf32>
    %cst_4 = arith.constant -1.000000e+02 : f32
    %8 = vector.broadcast %cst_4 : f32 to vector<16x128xf32>
    %9 = arith.maximumf %7, %8 : vector<16x128xf32>
    %10 = arith.mulf %1, %4 : vector<16x128xf32>
    %cst_5 = arith.constant 1.000000e+00 : f32
    %11 = vector.broadcast %cst_5 : f32 to vector<16x128xf32>
    %12 = arith.subf %11, %1 : vector<16x128xf32>
    %13 = arith.mulf %12, %9 : vector<16x128xf32>
    %14 = arith.addf %10, %13 : vector<16x128xf32>
    %cst_6 = arith.constant 0.000000e+00 : f32
    %15 = vector.broadcast %cst_6 : f32 to vector<16x128xf32>
    %16 = arith.subf %15, %14 : vector<16x128xf32>
    %17 = vector.shape_cast %16 : vector<16x128xf32> to vector<2x8x128xf32>
    %cst_7 = arith.constant dense<0.000000e+00> : vector<8x128xf32>
    %18 = vector.multi_reduction <add>, %17, %cst_7 [0] : vector<2x8x128xf32> to vector<8x128xf32>
    %19 = vector.shape_cast %18 : vector<8x128xf32> to vector<1x8x128xf32>
    %cst_8 = arith.constant dense<0.000000e+00> : vector<1xf32>
    %20 = vector.multi_reduction <add>, %19, %cst_8 [1, 2] : vector<1x8x128xf32> to vector<1xf32>
    %21 = vector.shape_cast %20 : vector<1xf32> to vector<1x1x1xf32>
    %22 = vector.extract %21[0, 0, 0] : f32 from vector<1x1x1xf32>
    %cst_9 = arith.constant 2.048000e+03 : f32
    %23 = arith.divf %22, %cst_9 : f32
    %c0_10 = arith.constant 0 : index
    %c0_11 = arith.constant 0 : index
    %24 = memref.load %arg3[%c0_10, %c0_11] : memref<1x1xf32, #tpu.memory_space<smem>>
    memref.store %23, %arg3[%c0_10, %c0_11] : memref<1x1xf32, #tpu.memory_space<smem>>
    return
  }
  func.func @transform_0(%arg0: i32) -> (i32, i32) {
    %c0_i32 = arith.constant 0 : i32
    %c0_i32_0 = arith.constant 0 : i32
    return %arg0, %c0_i32 : i32, i32
  }
  func.func @transform_1(%arg0: i32) -> (i32, i32) {
    %c0_i32 = arith.constant 0 : i32
    %c0_i32_0 = arith.constant 0 : i32
    return %arg0, %c0_i32 : i32, i32
  }
  func.func @transform_2(%arg0: i32) -> (i32, i32) {
    %c0_i32 = arith.constant 0 : i32
    %c0_i32_0 = arith.constant 0 : i32
    %c0_i32_1 = arith.constant 0 : i32
    return %c0_i32, %c0_i32_0 : i32, i32
  }
}

</mosaic_0001>

<bundles_post_ra>
// kernel: tpu_custom_call.1
= control target key start
LH: loop header
LB: loop body
LE: loop exit
PB: predicated region body
PF: predicated region fallthrough
CT: control target
= control target key end

     0   :  { %7 = vsyncpa [#allocation3], 0  ;;  %s210_s0 = inlined_call_operand.hbm [shape: f32[16,128], index: 0, kind: input, shape index: {}]   ;;  %s211_s1 = inlined_call_operand.hbm [shape: f32[16,128], index: 1, kind: input, shape index: {}]   ;;  %s212_s2 = inlined_call_operand.hbm [shape: f32[1,1], index: 2, kind: output, shape index: {}]  }
   0x1   :  { %8 = vsyncpa [#allocation6], 0 }
   0x2   :  { %9 = vsyncpa [#allocation4], 0  ;;  %s181_s9 = smov [#allocation2]  }
   0x3   :  { %s15_s10 = sshll.u32 %s181_s9, 4  ;;  %s16_s10 = int_to_ptr.vmem [resolvable:$true] %s15_s10 }
   0x4   :  { %s135_s11 = scalar_lea.vmem %s16_s10, 256  ;;  %p140_p1 = scmp.lt.s32.totalorder %s16_s10, %s16_s10 }
   0x5   :  { %p136_p0 = scmp.ne.s32.totalorder %s16_s10, %s135_s11  ;;  %p141_p2 = scmp.lt.s32.totalorder %s135_s11, %s135_s11 }
   0x7   :  { %p142_p3 = por %p141_p2, %p140_p1 }
   0x9   :  { %p143_p4 = pnand %p142_p3, %p136_p0 }
   0xb   :  { %146 = shalt.err (!%p143_p4)
}
   0xc   :  { %s182_s12 = smov 128   ;;  %s183_s13 = smov 8  }
   0xd   :  { %21 = dma.hbm_to_vmem [thread:$0]  %s210_s0, 256, %s16_s10, [#allocation3], %s182_s12, %s182_s12, %s183_s13  }
   0xe   :  { %s184_s16 = smov [#allocation5]  }
   0xf   :  { %s27_s17 = sshll.u32 %s184_s16, 4  ;;  %s28_s17 = int_to_ptr.vmem [resolvable:$true] %s27_s17 }
  0x10   :  { %s155_s18 = scalar_lea.vmem %s28_s17, 256  ;;  %p160_p6 = scmp.lt.s32.totalorder %s28_s17, %s28_s17 }
  0x11   :  { %p156_p5 = scmp.ne.s32.totalorder %s28_s17, %s155_s18  ;;  %p161_p7 = scmp.lt.s32.totalorder %s155_s18, %s155_s18 }
  0x13   :  { %p162_p8 = por %p161_p7, %p160_p6 }
  0x15   :  { %p163_p9 = pnand %p162_p8, %p156_p5 }
  0x17   :  { %166 = shalt.err (!%p163_p9)
}
  0x18   :  { %33 = dma.hbm_to_vmem [thread:$0]  %s211_s1, 256, %s28_s17, [#allocation6], %s182_s12, %s182_s12, %s183_s13  }
  0x19   :  { %175 = dma.done.wait [#allocation3], 256  }
  0x1a   :  { %176 = vsyncadd [#allocation3], 4294967040 }
  0x1b   :  { %177 = dma.done.wait [#allocation6], 256  }
  0x1c   :  { %178 = vsyncadd [#allocation6], 4294967040  ;;  %v40_v0 = vld [vmem:[#allocation2] sm:$0xff]  ;;  %v41_v1 = vld [vmem:[#allocation2 + $0x8] sm:$0xff]  ;;  %s185_s21 = smov [#allocation7]  }
  0x1d   :  { %119 = vlog2.f32 %v40_v0  ;;  %v50_v2 = vsub.f32 0.0, %v40_v0  ;;  %v51_v3 = vsub.f32 0.0, %v41_v1  ;;  %v42_v16 = vld [vmem:[#allocation5] sm:$0xff]  ;;  %v43_v19 = vld [vmem:[#allocation5 + $0x8] sm:$0xff] }
  0x1e   :  { %121 = vlog2.f32 %v41_v1  ;;  %v74_v26 = vsub.f32 1.0, %v42_v16  ;;  %v75_v28 = vsub.f32 1.0, %v43_v19 }
  0x1f   :  { %v52_v4 = vadd.f32 1.0, %v50_v2  ;;  %v61_v5 = vadd.f32 1.0, %v51_v3  ;;  %v55_v6 = vmul.f32 -0.5, %v50_v2  ;;  %v64_v7 = vmul.f32 -0.5, %v51_v3 }
  0x20   :  { %v58_v10 = vand.u32 2147483647, %v50_v2  ;;  %v67_v14 = vand.u32 2147483647, %v51_v3 }
  0x21   :  { %123 = vlog2.f32 %v52_v4  ;;  %v56_v8 = vadd.f32 1.0, %v55_v6  ;;  %v65_v11 = vadd.f32 1.0, %v64_v7 }
  0x22   :  { %125 = vlog2.f32 %v61_v5  ;;  %vm59_vm0 = vcmp.lt.f32.partialorder %v58_v10, 0.0004427343  ;;  %vm68_vm1 = vcmp.lt.f32.partialorder %v67_v14, 0.0004427343 }
  0x23   :  { %v57_v17 = vmul.f32 %v56_v8, %v50_v2  ;;  %v66_v21 = vmul.f32 %v65_v11, %v51_v3 }
  0x2a   :  { %v120_v9 = vpop.eup %119 }
  0x2b   :  { %v122_v12 = vpop.eup %121  ;;  %v45_v13 = vmul.f32 0.6931472, %v120_v9 }
  0x2c   :  { %v47_v15 = vmul.f32 0.6931472, %v122_v12 }
  0x2d   :  { %v48_v20 = vmax.f32 %v45_v13, -100.0 }
  0x2e   :  { %v124_v18 = vpop.eup %123  ;;  %v49_v23 = vmax.f32 %v47_v15, -100.0 }
  0x2f   :  { %v126_v22 = vpop.eup %125  ;;  %v54_v24 = vmul.f32 0.6931472, %v124_v18  ;;  %v72_v31 = vmul.f32 %v48_v20, %v42_v16 }
  0x30   :  { %v63_v25 = vmul.f32 0.6931472, %v126_v22  ;;  %v73_v33 = vmul.f32 %v49_v23, %v43_v19 }
  0x31   :  { %v60_v27 = vsel %vm59_vm0, %v57_v17, %v54_v24 }
  0x32   :  { %v69_v29 = vsel %vm68_vm1, %v66_v21, %v63_v25  ;;  %v70_v30 = vmax.f32 %v60_v27, -100.0 }
  0x33   :  { %v71_v32 = vmax.f32 %v69_v29, -100.0 }
  0x34   :  { %v76_v34 = vmul.f32 %v74_v26, %v70_v30 }
  0x35   :  { %v77_v35 = vmul.f32 %v75_v28, %v71_v32 }
  0x36   :  { %v78_v36 = vadd.f32 %v76_v34, %v72_v31 }
  0x37   :  { %v79_v37 = vadd.f32 %v77_v35, %v73_v33 }
  0x38   :  { %v80_v38 = vsub.f32 0.0, %v78_v36 }
  0x39   :  { %v81_v39 = vsub.f32 0.0, %v79_v37 }
  0x3b   :  { %v82_v40 = vadd.f32 %v81_v39, %v80_v38 }
  0x3d   :  { %83 = vadd.xlane.f32.xlu0 %v82_v40 }
  0xc6   :  { %v84_v41 = vpop.xlane.xlu0 %83 }
  0xc7   :  { %v85_v42 = vrot.slane %v84_v41, 4 }
  0xc9   :  { %v86_v43 = vadd.f32 %v85_v42, %v84_v41 }
  0xcb   :  { %v87_v44 = vrot.slane %v86_v43, 2 }
  0xcd   :  { %v88_v45 = vadd.f32 %v87_v44, %v86_v43 }
  0xcf   :  { %v89_v46 = vrot.slane %v88_v45, 1 }
  0xd1   :  { %v90_v47 = vadd.f32 %v89_v46, %v88_v45 }
  0xd3   :  { %112 = vpush %v90_v47 }
 0x104   :  { %s113_s0 = spop %112 }
 0x105   :  { %s94_s1 = smul.f32 0.00048828125, %s113_s0 }
 0x107   :  { %96 = sst [smem:[#allocation7]] %s94_s1 }
 0x108   :  { %104 = dma.smem_to_hbm %s185_s21, 16, %s212_s2, [#allocation4]  }
 0x109   :  { %179 = dma.done.wait [#allocation4], 16  }
 0x10a   :  { %180 = vsyncadd [#allocation4], 4294967280 }
 0x10b   :  { %108 = sfence }
 0x10c   :  { %109 = vsyncpa [#allocation3], 1 }
 0x10d   :  { %110 = vsyncpa [#allocation6], 1 }
 0x10e   :  { %111 = vsyncpa [#allocation4], 1 }

</bundles_post_ra>
